<compile_context>
chip_gen: v6e
topology: v6e:2x2x1
jax: 0.10.0
libtpu: 0.0.40
codegen_flags: <defaults>
</compile_context>

<pallas_src>
import functools

import jax
import jax.numpy as jnp
from jax.experimental import pallas as pl
from jax.experimental.pallas import tpu as pltpu


_TM_MAX = 1024  # batch-tile cap; ~1.5 MiB total VMEM at tm=1024 (safe on v7x 64 MiB)


def _round_up(a, m):
    return ((a + m - 1) // m) * m


def _tensorcores_per_device():
    """Best-effort TC count per JAX device (v7x / megacore parts expose 2)."""
    try:
        kind = jax.devices()[0].device_kind.lower()
    except Exception:
        return 1
    return 2 if any(t in kind for t in ("v7", "v5p", "v4")) else 1


# ----------------------------------------------------------------------------
# Fused kernel: stage-0 projection + ReLU (with MP pass-through), stage-1
# Linear + ReLU, Dropout(eval)=identity, stage-2 padded head Linear.
# bf16 MXU operands, f32 accumulation; bias add / ReLU on the VPU in f32.
# ----------------------------------------------------------------------------
def _fused_kernel(x_ref, w_ref, b_ref, o_ref, *, k0, w):
    bf16 = jnp.bfloat16
    f32 = jnp.float32

    x = x_ref[...].astype(bf16)                                  # (tm, k0)

    # stage 0: relu([g1|g2|MP] @ [w_pre | +I | -I] + b_pre)
    feat = jnp.dot(x, w_ref[0:k0, :], preferred_element_type=f32)
    feat = jnp.maximum(feat + b_ref[0:1, :], 0.0)                # (tm, w) f32

    # stage 1: relu(feat @ w1' + b1)   (MP contribution absorbed into w1')
    h = jnp.dot(feat.astype(bf16), w_ref[k0:k0 + w, :],
                preferred_element_type=f32)
    h = jnp.maximum(h + b_ref[1:2, :], 0.0)                      # (tm, w) f32
    # nn.Dropout(0.1) in eval mode -> identity

    # stage 2 (hooked layer): zero-padded to 128 lanes -> unmasked dense store
    o = jnp.dot(h.astype(bf16), w_ref[k0 + w:k0 + 2 * w, :],
                preferred_element_type=f32)
    o_ref[...] = o + b_ref[2:3, :]
    # TODO(synk): for very large B, store the head output in bf16 or
    # transposed (batch on lanes) to cut the 64x f32 write amplification.


# ----------------------------------------------------------------------------
# Wrapper: single jitted pallas_call over a 1-D batch grid, weights resident.
# ----------------------------------------------------------------------------
@jax.jit
def feature_extractor_forward(packed, g1, g2, MP):
    ws, bias = packed["wslab"], packed["bias"]
    W = ws.shape[1]
    k0 = ws.shape[0] - 2 * W

    B = g1.shape[0]
    in0 = g1.shape[1] + g2.shape[1] + MP.shape[1]

    # Tiling: 1 grid step on single-TC parts, >=2 on 2-TC parts (megacore).
    n_cores = _tensorcores_per_device()
    B8 = _round_up(B, 8)
    steps = n_cores if (n_cores > 1 and B8 >= 8 * n_cores) else 1
    tm = min(_TM_MAX, _round_up(pl.cdiv(B8, steps), 8))
    grid = pl.cdiv(B8, tm)
    Bp = grid * tm

    # One activation input: host-side concat + pad (rows -> Bp, cols -> k0).
    x = jnp.concatenate([g1, g2, MP], axis=1)
    x = jnp.pad(x, ((0, Bp - B), (0, k0 - in0)))

    flops = 2 * Bp * W * (k0 + 2 * W)
    bytes_accessed = (x.size * 4 + ws.size * 2 + bias.size * 4 + Bp * W * 4)

    out = pl.pallas_call(
        functools.partial(_fused_kernel, k0=k0, w=W),
        out_shape=jax.ShapeDtypeStruct((Bp, W), jnp.float32),
        grid=(grid,),
        in_specs=[
            pl.BlockSpec((tm, k0), lambda i: (i, 0)),     # activations (tiled)
            pl.BlockSpec(ws.shape, lambda i: (0, 0)),     # weight slab (resident)
            pl.BlockSpec(bias.shape, lambda i: (0, 0)),   # bias block (resident)
        ],
        out_specs=pl.BlockSpec((tm, W), lambda i: (i, 0)),
        compiler_params=pltpu.CompilerParams(
            dimension_semantics=("parallel",)),
        cost_estimate=pl.CostEstimate(flops=flops, transcendentals=0,
                                      bytes_accessed=bytes_accessed),
    )(x, ws, bias)

    # FeatureExtractor returns the hooked (final) Linear's output; only the
    # first 2 of the 128 padded columns (and first B rows) are valid.
    return out[:B, :2]


# ----------------------------------------------------------------------------
# Parameters: module-style f32 init, then packed once (slab / bf16 / padded).
# ----------------------------------------------------------------------------
def init_params(key, g_dim, fusion_feature_size, mp_dim=4):
    F = fusion_feature_size
    in_size = F + mp_dim
    hidden = F * 4
    out_size = 2
    k = jax.random.split(key, 6)
    scale = 0.05
    return {
        # stand-in pre_model: (2*g_dim) -> F
        "w_pre": scale * jax.random.normal(k[0], (2 * g_dim, F), jnp.float32),
        "b_pre": scale * jax.random.normal(k[1], (1, F), jnp.float32),
        # Predictor: Linear(in_size, hidden), Linear(hidden, 2)
        "w1": scale * jax.random.normal(k[2], (in_size, hidden), jnp.float32),
        "b1": scale * jax.random.normal(k[3], (1, hidden), jnp.float32),
        "w2": scale * jax.random.normal(k[4], (hidden, out_size), jnp.float32),
        "b2": scale * jax.random.normal(k[5], (1, out_size), jnp.float32),
    }


def pack_params(params, g_dim, fusion_feature_size, mp_dim=4):
    f32, bf16 = jnp.float32, jnp.bfloat16
    F = fusion_feature_size
    H = params["w1"].shape[1]
    out_size = params["w2"].shape[1]
    in0 = 2 * g_dim + mp_dim
    K0 = _round_up(in0, 8)                       # sublane-aligned slab offsets
    W = max(_round_up(F + 2 * mp_dim, 128), _round_up(H, 128),
            _round_up(out_size, 128))            # lane-dense width (=128 here)

    # Stage-0 weight: [w_pre | +I | -I] -> feat plus relu(+-MP) pass-through.
    w0 = jnp.zeros((K0, W), f32)
    w0 = w0.at[:2 * g_dim, :F].set(params["w_pre"])
    eye = jnp.eye(mp_dim, dtype=f32)
    w0 = w0.at[2 * g_dim:in0, F:F + mp_dim].set(eye)
    w0 = w0.at[2 * g_dim:in0, F + mp_dim:F + 2 * mp_dim].set(-eye)

    # Stage-1 weight with the MP rows absorbed (MP = relu(MP) - relu(-MP)).
    w1 = jnp.zeros((W, W), f32)
    w1 = w1.at[:F, :H].set(params["w1"][:F])
    w1 = w1.at[F:F + mp_dim, :H].set(params["w1"][F:])
    w1 = w1.at[F + mp_dim:F + 2 * mp_dim, :H].set(-params["w1"][F:])

    # Stage-2 (hooked Linear), zero-padded to the lane-dense 128-wide head.
    w2 = jnp.zeros((W, W), f32).at[:H, :out_size].set(params["w2"])

    wslab = jnp.concatenate([w0, w1, w2], axis=0).astype(bf16)  # (K0+2W, W)

    bias = jnp.zeros((8, W), f32)                # one (8,128) f32 bias block
    bias = bias.at[0, :F].set(params["b_pre"][0])
    bias = bias.at[1, :H].set(params["b1"][0])
    bias = bias.at[2, :out_size].set(params["b2"][0])

    return {"wslab": wslab, "bias": bias}


# Plain-JAX reference mirroring the kernel's packed bf16/f32 structure.
def _ref_forward_packed(packed, g1, g2, MP):
    bf16, f32 = jnp.bfloat16, jnp.float32
    ws, b = packed["wslab"], packed["bias"]
    W = ws.shape[1]
    k0 = ws.shape[0] - 2 * W
    x = jnp.concatenate([g1, g2, MP], axis=1)
    x = jnp.pad(x, ((0, 0), (0, k0 - x.shape[1]))).astype(bf16)
    feat = jnp.maximum(
        jnp.dot(x, ws[:k0], preferred_element_type=f32) + b[0:1], 0.0)
    h = jnp.maximum(
        jnp.dot(feat.astype(bf16), ws[k0:k0 + W],
                preferred_element_type=f32) + b[1:2], 0.0)
    o = jnp.dot(h.astype(bf16), ws[k0 + W:], preferred_element_type=f32) + b[2:3]
    return o[:, :2]


# Full-f32 reference of the original (unpacked) module semantics.
def _ref_forward_f32(params, g1, g2, MP):
    x = jnp.concatenate([g1, g2], axis=1)
    feat = jax.nn.relu(x @ params["w_pre"] + params["b_pre"])
    h = jax.nn.relu(jnp.concatenate([feat, MP], axis=1) @ params["w1"]
                    + params["b1"])
    return h @ params["w2"] + params["b2"]       # hooked layer output


if __name__ == "__main__":
    key = jax.random.PRNGKey(0)
    batch = 8
    g_dim = 16
    fusion_feature_size = 32
    mp_dim = 4

    kp, kg1, kg2, kmp = jax.random.split(key, 4)
    params = init_params(kp, g_dim, fusion_feature_size, mp_dim)
    packed = pack_params(params, g_dim, fusion_feature_size, mp_dim)

    g1 = jax.random.normal(kg1, (batch, g_dim), jnp.float32)
    g2 = jax.random.normal(kg2, (batch, g_dim), jnp.float32)
    MP = jax.random.normal(kmp, (batch, mp_dim), jnp.float32)

    out = jax.block_until_ready(feature_extractor_forward(packed, g1, g2, MP))
    assert out.shape == (batch, 2)

    ref_p = _ref_forward_packed(packed, g1, g2, MP)
    assert jnp.allclose(out, ref_p, atol=1e-3, rtol=1e-3), \
        float(jnp.max(jnp.abs(out - ref_p)))

    ref_f = _ref_forward_f32(params, g1, g2, MP)
    assert jnp.allclose(out, ref_f, atol=3e-2, rtol=3e-2), \
        float(jnp.max(jnp.abs(out - ref_f)))

    print("KERNEL_OK")
</pallas_src>

<mosaic_0001>
module attributes {stable_mosaic.version = 11 : i64} {
  func.func @_fused_kernel(%arg0: i32, %arg1: memref<8x40xf32, #tpu.memory_space<vmem>>, %arg2: memref<296x128xbf16, #tpu.memory_space<vmem>>, %arg3: memref<8x128xf32, #tpu.memory_space<vmem>>, %arg4: memref<8x128xf32, #tpu.memory_space<vmem>>) attributes {dimension_semantics = [#tpu.dimension_semantics<parallel>], iteration_bounds = array<i64: 1>, scalar_prefetch = 0 : i64, scratch_operands = 0 : i64, tpu.core_type = #tpu.core_type<tc>, window_params = [{transform_indices = @transform_0, window_bounds = array<i64: 8, 40>}, {pipeline_mode = #tpu.pipeline_mode<synchronous>, transform_indices = @transform_1, window_bounds = array<i64: 296, 128>}, {pipeline_mode = #tpu.pipeline_mode<synchronous>, transform_indices = @transform_2, window_bounds = array<i64: 8, 128>}, {transform_indices = @transform_3, window_bounds = array<i64: 8, 128>}]} {
    %c0 = arith.constant 0 : index
    %c0_0 = arith.constant 0 : index
    %0 = vector.load %arg1[%c0, %c0_0] : memref<8x40xf32, #tpu.memory_space<vmem>>, vector<8x40xf32>
    %1 = arith.truncf %0 : vector<8x40xf32> to vector<8x40xbf16>
    %c0_1 = arith.constant 0 : index
    %c0_2 = arith.constant 0 : index
    %2 = vector.load %arg2[%c0_1, %c0_2] : memref<296x128xbf16, #tpu.memory_space<vmem>>, vector<40x128xbf16>
    %cst = arith.constant dense<0.000000e+00> : vector<8x128xf32>
    %3 = tpu.matmul %1, %2, %cst {dimension_numbers = #tpu.dot_dimension_numbers<[1], [0], [0], [1], [0, 0, 1, 1], [], []>} : vector<8x40xbf16>, vector<40x128xbf16>, vector<8x128xf32> -> vector<8x128xf32>
    %c0_3 = arith.constant 0 : index
    %c0_4 = arith.constant 0 : index
    %4 = vector.load %arg3[%c0_3, %c0_4] : memref<8x128xf32, #tpu.memory_space<vmem>>, vector<1x128xf32>
    %5 = vector.broadcast %4 : vector<1x128xf32> to vector<8x128xf32>
    %6 = arith.addf %3, %5 : vector<8x128xf32>
    %cst_5 = arith.constant 0.000000e+00 : f32
    %7 = vector.broadcast %cst_5 : f32 to vector<8x128xf32>
    %8 = arith.maximumf %6, %7 : vector<8x128xf32>
    %9 = arith.truncf %8 : vector<8x128xf32> to vector<8x128xbf16>
    %c40 = arith.constant 40 : index
    %c0_6 = arith.constant 0 : index
    %10 = vector.load %arg2[%c40, %c0_6] : memref<296x128xbf16, #tpu.memory_space<vmem>>, vector<128x128xbf16>
    %cst_7 = arith.constant dense<0.000000e+00> : vector<8x128xf32>
    %11 = tpu.matmul %9, %10, %cst_7 {dimension_numbers = #tpu.dot_dimension_numbers<[1], [0], [0], [1], [0, 0, 1, 1], [], []>} : vector<8x128xbf16>, vector<128x128xbf16>, vector<8x128xf32> -> vector<8x128xf32>
    %c1 = arith.constant 1 : index
    %c0_8 = arith.constant 0 : index
    %12 = vector.load %arg3[%c1, %c0_8] : memref<8x128xf32, #tpu.memory_space<vmem>>, vector<1x128xf32>
    %13 = vector.broadcast %12 : vector<1x128xf32> to vector<8x128xf32>
    %14 = arith.addf %11, %13 : vector<8x128xf32>
    %cst_9 = arith.constant 0.000000e+00 : f32
    %15 = vector.broadcast %cst_9 : f32 to vector<8x128xf32>
    %16 = arith.maximumf %14, %15 : vector<8x128xf32>
    %17 = arith.truncf %16 : vector<8x128xf32> to vector<8x128xbf16>
    %c168 = arith.constant 168 : index
    %c0_10 = arith.constant 0 : index
    %18 = vector.load %arg2[%c168, %c0_10] : memref<296x128xbf16, #tpu.memory_space<vmem>>, vector<128x128xbf16>
    %cst_11 = arith.constant dense<0.000000e+00> : vector<8x128xf32>
    %19 = tpu.matmul %17, %18, %cst_11 {dimension_numbers = #tpu.dot_dimension_numbers<[1], [0], [0], [1], [0, 0, 1, 1], [], []>} : vector<8x128xbf16>, vector<128x128xbf16>, vector<8x128xf32> -> vector<8x128xf32>
    %c2 = arith.constant 2 : index
    %c0_12 = arith.constant 0 : index
    %20 = vector.load %arg3[%c2, %c0_12] : memref<8x128xf32, #tpu.memory_space<vmem>>, vector<1x128xf32>
    %21 = vector.broadcast %20 : vector<1x128xf32> to vector<8x128xf32>
    %22 = arith.addf %19, %21 : vector<8x128xf32>
    %c0_13 = arith.constant 0 : index
    %c0_14 = arith.constant 0 : index
    %23 = vector.load %arg4[%c0_13, %c0_14] : memref<8x128xf32, #tpu.memory_space<vmem>>, vector<8x128xf32>
    tpu.vector_store %arg4[%c0_13, %c0_14], %22 {strides = array<i32>} : memref<8x128xf32, #tpu.memory_space<vmem>>, vector<8x128xf32>,
    return
  }
  func.func @transform_0(%arg0: i32) -> (i32, i32) {
    %c0_i32 = arith.constant 0 : i32
    %c0_i32_0 = arith.constant 0 : i32
    return %arg0, %c0_i32 : i32, i32
  }
  func.func @transform_1(%arg0: i32) -> (i32, i32) {
    %c0_i32 = arith.constant 0 : i32
    %c0_i32_0 = arith.constant 0 : i32
    %c0_i32_1 = arith.constant 0 : i32
    return %c0_i32, %c0_i32_0 : i32, i32
  }
  func.func @transform_2(%arg0: i32) -> (i32, i32) {
    %c0_i32 = arith.constant 0 : i32
    %c0_i32_0 = arith.constant 0 : i32
    %c0_i32_1 = arith.constant 0 : i32
    return %c0_i32, %c0_i32_0 : i32, i32
  }
  func.func @transform_3(%arg0: i32) -> (i32, i32) {
    %c0_i32 = arith.constant 0 : i32
    %c0_i32_0 = arith.constant 0 : i32
    return %arg0, %c0_i32 : i32, i32
  }
}

</mosaic_0001>

<bundles_post_ra>
// kernel: feature_extractor_forward.1
= control target key start
LH: loop header
LB: loop body
LE: loop exit
PB: predicated region body
PF: predicated region fallthrough
CT: control target
= control target key end

     0   :  { %8 = vsyncpa [#allocation3], 0  ;;  %s473_s12 = smov [#allocation2]   ;;  %s541_s0 = inlined_call_operand.vmem [shape: f32[8,40], index: 0, kind: input, shape index: {}]   ;;  %s542_s1 = inlined_call_operand.hbm [shape: bf16[296,128], index: 1, kind: input, shape index: {}]   ;;  %s543_s2 = inlined_call_operand.vmem [shape: f32[8,128], index: 2, kind: input, shape index: {}]   ;;  %s544_s3 = inlined_call_operand.vmem [shape: f32[8,128], index: 3, kind: output, shape index: {}]  }
   0x1   :  { %s16_s13 = sshll.u32 %s473_s12, 4  ;;  %s17_s13 = int_to_ptr.vmem [resolvable:$true] %s16_s13 }
   0x2   :  { %s459_s14 = scalar_lea.vmem %s17_s13, 2368  ;;  %p464_p1 = scmp.lt.s32.totalorder %s17_s13, %s17_s13 }
   0x3   :  { %p460_p0 = scmp.ne.s32.totalorder %s17_s13, %s459_s14  ;;  %p465_p2 = scmp.lt.s32.totalorder %s459_s14, %s459_s14 }
   0x5   :  { %p466_p3 = por %p465_p2, %p464_p1 }
   0x7   :  { %p467_p4 = pnand %p466_p3, %p460_p0 }
   0x9   :  { %470 = shalt.err (!%p467_p4)
}
   0xa   :  { %s474_s15 = smov 64   ;;  %s475_s16 = smov 4  }
   0xb   :  { %22 = dma.hbm_to_vmem [thread:$0]  %s542_s1, 2368, %s17_s13, [#allocation3], %s474_s15, %s474_s15, %s475_s16  }
   0xc   :  { %471 = dma.done.wait [#allocation3], 2368  }
   0xd   :  { %472 = vsyncadd [#allocation3], 4294964928  ;;  %v476_v0 = vmov 0.0   ;;  %vm477_vm0 = vmmov 0   ;;  %vm60_vm1 = vcmask 1043456   ;;  %v433_v3 = vld [vmem:[#allocation2 + $0x8] sm:$0xff]  }
   0xe   :  { %377 = vmatprep.subr.bf16.mxu0 %v476_v0  ;;  %383 = vmatprep.mubr.msk.bf16.mxu0 %vm477_vm0, %v476_v0  ;;  %v432_v1 = vld [vmem:[#allocation2 + $0x10] ss:$0 sps:$4 sm:$0xff]   ;;  %v436_v5 = vld [vmem:[#allocation2 + $0x44] sm:$0xff]   ;;  %vm56_vm2 = vcmask 326656   ;;  %v437_v8 = vld [vmem:[#allocation2 + $0x3c] sm:$0xff]  }
   0xf   :  { %387 = vmatprep.subr.bf16.mxu1 %v476_v0  ;;  %403 = vmatprep.mubr.msk.bf16.mxu1 %vm477_vm0, %v476_v0  ;;  %v62_v2 = vsel %vm60_vm1, %v432_v1, 0  ;;  %v435_v4 = vld [vmem:[#allocation2 + $0x4c] sm:$0xff]   ;;  %v434_v6 = vld [vmem:[#allocation2] sm:$0xff]   ;;  %v438_v10 = vld [vmem:[#allocation2 + $0x34] sm:$0xff]  }
  0x10   :  { %378 = vmatpush3.bf16.msra.mxu0 %v62_v2  ;;  %388 = vmatpush3.bf16.msra.mxu1 %v435_v4  ;;  %v29_v7 = vld [vmem:[%s541_s0] sm:$0xff]  ;;  %v439_v11 = vld [vmem:[#allocation2 + $0x2c] sm:$0xff]   ;;  %v442_v14 = vld [vmem:[#allocation2 + $0x14] sm:$0xff]  }
  0x11   :  { %379 = vmatprep.subr.bf16.mxu0 %v476_v0  ;;  %389 = vmatprep.subr.bf16.mxu1 %v476_v0  ;;  %v30_v9 = vpack.c.bf16 %v29_v7, %v29_v7  ;;  %v440_v12 = vld [vmem:[#allocation2 + $0x24] sm:$0xff]   ;;  %v441_v13 = vld [vmem:[#allocation2 + $0x1c] sm:$0xff]   ;;  %v443_v15 = vld [vmem:[#allocation2 + $0x8c] sm:$0xff]  }
  0x12   :  { %v444_v16 = vld [vmem:[#allocation2 + $0x84] sm:$0xff]   ;;  %v445_v17 = vld [vmem:[#allocation2 + $0x7c] sm:$0xff]   ;;  %v446_v18 = vld [vmem:[#allocation2 + $0x74] sm:$0xff]  }
  0x13   :  { %v447_v19 = vld [vmem:[#allocation2 + $0x6c] sm:$0xff]   ;;  %v448_v20 = vld [vmem:[#allocation2 + $0x64] sm:$0xff]   ;;  %v332_v21 = vld [vmem:[%s543_s2] ss:$0 sm:$0xff] }
  0x14   :  { %380 = vmatpush3.bf16.msra.mxu0 %v433_v3  ;;  %390 = vmatpush3.bf16.msra.mxu1 %v436_v5  ;;  %v449_v29 = vld [vmem:[#allocation2 + $0x5c] sm:$0xff]   ;;  %v450_v30 = vld [vmem:[#allocation2 + $0x54] sm:$0xff]  }
  0x15   :  { %381 = vmatprep.subr.bf16.mxu0 %v476_v0  ;;  %391 = vmatprep.subr.bf16.mxu1 %v476_v0  ;;  %v337_v31 = vld [vmem:[%s543_s2 + $0x1] ss:$0 sm:$0xff]  ;;  %v346_v39 = vld [vmem:[%s543_s2 + $0x2] ss:$0 sm:$0xff] }
  0x18   :  { %382 = vmatpush3.bf16.msra.mxu0 %v434_v6  ;;  %392 = vmatpush3.bf16.msra.mxu1 %v437_v8 }
  0x19   :  { %407 = vmatprep.subr.bf16.mxu0 %v476_v0  ;;  %393 = vmatprep.subr.bf16.mxu1 %v476_v0 }
  0x1b   :  { %384 = vmatmul.mubr.msk.bf16.vlgmr.msra.gmra.mxu0 %vm56_vm2, %v30_v9 }
  0x1c   :  { %423 = vmatprep.mubr.msk.bf16.mxu0 %vm477_vm0, %v476_v0  ;;  %394 = vmatpush3.bf16.msra.mxu1 %v438_v10 }
  0x1d   :  { %395 = vmatprep.subr.bf16.mxu1 %v476_v0  ;;  %408 = vmatpush3.bf16.msra.mxu0 %v443_v15 }
  0x1e   :  { %409 = vmatprep.subr.bf16.mxu0 %v476_v0 }
  0x20   :  { %396 = vmatpush3.bf16.msra.mxu1 %v439_v11 }
  0x21   :  { %397 = vmatprep.subr.bf16.mxu1 %v476_v0  ;;  %410 = vmatpush3.bf16.msra.mxu0 %v444_v16 }
  0x22   :  { %411 = vmatprep.subr.bf16.mxu0 %v476_v0 }
  0x24   :  { %398 = vmatpush3.bf16.msra.mxu1 %v440_v12 }
  0x25   :  { %399 = vmatprep.subr.bf16.mxu1 %v476_v0  ;;  %412 = vmatpush3.bf16.msra.mxu0 %v445_v17 }
  0x26   :  { %413 = vmatprep.subr.bf16.mxu0 %v476_v0 }
  0x28   :  { %400 = vmatpush3.bf16.msra.mxu1 %v441_v13 }
  0x29   :  { %401 = vmatprep.subr.bf16.mxu1 %v476_v0  ;;  %414 = vmatpush3.bf16.msra.mxu0 %v446_v18 }
  0x2a   :  { %415 = vmatprep.subr.bf16.mxu0 %v476_v0 }
  0x2c   :  { %402 = vmatpush3.bf16.msra.mxu1 %v442_v14 }
  0x2d   :  { %416 = vmatpush3.bf16.msra.mxu0 %v447_v19 }
  0x2e   :  { %417 = vmatprep.subr.bf16.mxu0 %v476_v0 }
  0x31   :  { %418 = vmatpush3.bf16.msra.mxu0 %v448_v20 }
  0x32   :  { %419 = vmatprep.subr.bf16.mxu0 %v476_v0 }
  0x35   :  { %420 = vmatpush3.bf16.msra.mxu0 %v449_v29 }
  0x36   :  { %421 = vmatprep.subr.bf16.mxu0 %v476_v0 }
  0x39   :  { %422 = vmatpush3.bf16.msra.mxu0 %v450_v30 }
  0xdb   :  { %v98_v22 = vpop.f32.mrf.mxu0 }
  0xdc   :  { %v99_v23 = vadd.f32 %v332_v21, %v98_v22 }
  0xdd   :  { %v385_v24 = vpop.f32.mrf.mxu0 }
  0xde   :  { %v104_v25 = vmax.f32 %v99_v23, 0.0 }
  0xdf   :  { %v101_v26 = vpop.f32.mrf.mxu0 }
  0xe0   :  { %v105_v27 = vpack.c.bf16 %v104_v25, %v104_v25 }
  0xe1   :  { %v386_v28 = vpop.f32.mrf.mxu0 }
  0xe2   :  { %404 = vmatmul.mubr.bf16.vlgmr.msra.gmra.mxu1 %v105_v27 }
 0x1a2   :  { %v209_v32 = vpop.f32.mrf.mxu1 }
 0x1a3   :  { %v210_v33 = vadd.f32 %v337_v31, %v209_v32 }
 0x1a4   :  { %v405_v34 = vpop.f32.mrf.mxu1 }
 0x1a5   :  { %v215_v35 = vmax.f32 %v210_v33, 0.0 }
 0x1a6   :  { %v212_v36 = vpop.f32.mrf.mxu1 }
 0x1a7   :  { %v216_v37 = vpack.c.bf16 %v215_v35, %v215_v35 }
 0x1a8   :  { %v406_v38 = vpop.f32.mrf.mxu1 }
 0x1a9   :  { %424 = vmatmul.mubr.bf16.vlgmr.msra.gmra.mxu0 %v216_v37 }
 0x269   :  { %v320_v40 = vpop.f32.mrf.mxu0 }
 0x26a   :  { %v321_v41 = vadd.f32 %v346_v39, %v320_v40 }
 0x26b   :  { %v425_v42 = vpop.f32.mrf.mxu0 }
 0x26c   :  { %326 = vst [vmem:[%s544_s3] sm:$0xff] %v321_v41 }
 0x26d   :  { %v323_v43 = vpop.f32.mrf.mxu0 }
 0x26f   :  { %v426_v44 = vpop.f32.mrf.mxu0 }
 0x270   :  { %331 = vsyncpa [#allocation3], 1 }

</bundles_post_ra>
